<compile_context>
chip_gen: v5e
topology: v5e:2x2
jax: 0.10.0
libtpu: 0.0.40
codegen_flags: <defaults>
</compile_context>

<pallas_src>
import functools
import math

import jax
import jax.numpy as jnp
from jax.experimental import pallas as pl
from jax.experimental.pallas import tpu as pltpu


def code2vec_kernel(len_ref, es_ref, ep_ref, ee_ref, ws_ref, wp_ref, we_ref,
                    a_ref, ow_ref, ob_ref, o_ref, v_ref, *, t_valid):
    """One (batch-block, output-block) grid step.

    es/ep/ee: (Bt*T_pad, E) bf16  flattened embedding streams
    ws/wp/we: (E, E)        bf16  thirds of W^T
    a:        (1, E)        f32
    ow:       (E, O_tile)   bf16  slice of out.weight^T
    ob:       (1, O_tile)   f32
    o:        (Bt, O_tile)  f32
    v:        (Bt, E)       f32   scratch carried across the O axis
    """
    o_idx = pl.program_id(1)

    @pl.when(o_idx == 0)
    def _():
        rows, E = es_ref.shape
        Bt = len_ref.shape[0]
        T = rows // Bt

        # Concat-free main matmul: bf16 operands, f32 accumulation on the MXU.
        x = jnp.tanh(
            jnp.dot(es_ref[...], ws_ref[...], preferred_element_type=jnp.float32)
            + jnp.dot(ep_ref[...], wp_ref[...], preferred_element_type=jnp.float32)
            + jnp.dot(ee_ref[...], we_ref[...], preferred_element_type=jnp.float32))
        x3 = x.reshape(Bt, T, E)                     # free relayout: T % 8 == 0

        # Attention logits on the VPU (no degenerate N=1 MXU matmul).
        zlog = jnp.sum(x3 * a_ref[...], axis=-1)                     # (Bt, T)

        # Softmax over the ORIGINAL sequence positions (t < t_valid).  The T
        # padding added for sublane alignment is masked out; as in the torch
        # module there is NO length mask inside the softmax.
        t_idx = jax.lax.broadcasted_iota(jnp.int32, (Bt, T), 1)
        zlog = jnp.where(t_idx < t_valid, zlog, jnp.float32(-1e30))
        zmax = jnp.max(zlog, axis=1, keepdims=True)                  # (Bt, 1)
        ez = jnp.exp(zlog - zmax)
        z = ez * pl.reciprocal(jnp.sum(ez, axis=1, keepdims=True),
                               approx=True)                          # (Bt, T)

        # Length-truncated weighted sum: only t < length[b] contributes to v.
        zm = jnp.where(t_idx < len_ref[...], z, 0.0)                 # (Bt, T)
        v_ref[...] = jnp.sum(zm[:, :, None] * x3, axis=1)            # (Bt, E)

    # Final linear layer on this output tile (bf16 operands, f32 acc + bias).
    o_ref[...] = (jnp.dot(v_ref[...].astype(jnp.bfloat16), ow_ref[...],
                          preferred_element_type=jnp.float32)
                  + ob_ref[...])                                     # (Bt, O_tile)


def _round_up(x, m):
    return -(-x // m) * m


def _choose_bt(B, T_pad, target_rows):
    """Rows-per-step heuristic: large enough to amortize the ~0.35us per-step
    pipeline overhead, sublane/MXU aligned, and >= 2 batch blocks so v7x's two
    TensorCores both get work (neutral on single-TC v5e/v6e)."""
    align = max(8, 256 // math.gcd(T_pad, 256))   # Bt*T_pad % 256 == 0 (v6e/v7x MXU)
    bt = max(1, target_rows // T_pad)
    bt = max(align, (bt // align) * align)
    half = -(-B // 2)                             # keep at least 2 grid blocks
    if bt > half:
        bt = max(8, (half // 8) * 8) if half >= 8 else 8
    return bt


def _vmem_limit_bytes(bt, t_pad, e, o_tile):
    """Derive the scoped-VMEM limit from the actual tile working set instead of
    hard-coding (v7x only has 64 MiB per TC)."""
    rows = bt * t_pad
    stream = 3 * rows * e * 2 * 2              # bf16 embedding tiles, 2x buffered
    weights = (3 * e * e * 2 + e * 4) * 2      # W thirds (bf16) + a (f32)
    out_w = (e * o_tile * 2 + o_tile * 4) * 2  # out_w tile (bf16) + bias (f32)
    out = bt * o_tile * 4 * 2                  # f32 output tile, 2x buffered
    interm = rows * e * 4 * 2 + rows * 4 * 4   # x (f32) + softmax temporaries
    misc = bt * 4 * 2 + bt * e * 4             # lengths + v scratch
    need = int((stream + weights + out_w + out + interm + misc) * 1.25) + (4 << 20)
    return max(16 << 20, min(need, 96 << 20))


def code2vec_forward(starts, paths, ends, length, params, *,
                     target_rows=2048, o_tile_max=2048):
    """starts/paths/ends: (B, T) int32; length: (B,) int32."""
    node_emb = params["node_embedding"]      # (nodes_dim, E)
    path_emb = params["path_embedding"]      # (paths_dim, E)
    W = params["W"]                          # (E, 3E)
    a = params["a"]                          # (E, 1)
    out_w = params["out_w"]                  # (O, E)
    out_b = params["out_b"]                  # (O,)

    B, T = starts.shape
    E = node_emb.shape[1]
    O = out_w.shape[0]

    # ---- tiling -------------------------------------------------------------
    T_pad = _round_up(T, 8)                  # sublane-aligned sequence axis
    Bt = _choose_bt(B, T_pad, target_rows)
    num_b_blocks = max(2, -(-B // Bt))       # >= 2 blocks for v7x's 2 TCs
    B_pad = num_b_blocks * Bt

    O_pad = _round_up(max(O, 128), 128)      # lane-dense output (unmasked vst)
    O_tile = min(O_pad, _round_up(o_tile_max, 128))
    O_pad = _round_up(O_pad, O_tile)
    num_o_blocks = O_pad // O_tile

    # ---- pad index / length arrays (batch and sequence padding) -------------
    def pad_idx(x):
        return jnp.pad(x, ((0, B_pad - B), (0, T_pad - T)))
    starts_p, paths_p, ends_p = pad_idx(starts), pad_idx(paths), pad_idx(ends)
    lens = jnp.pad(length.astype(jnp.int32), (0, B_pad - B)).reshape(B_pad, 1)

    # ---- glue: bf16 gathers, streamed flat (no (B,T,3E) concat round trip) ---
    # TODO(synk): fuse the gather into the kernel (scalar-prefetch indices +
    # memory_space=pl.ANY tables + manual DMA gather) to remove the gathered
    # activations' HBM round trip entirely.
    node_bf = node_emb.astype(jnp.bfloat16)
    path_bf = path_emb.astype(jnp.bfloat16)
    emb_s = jnp.take(node_bf, starts_p, axis=0).reshape(B_pad * T_pad, E)
    emb_p = jnp.take(path_bf, paths_p, axis=0).reshape(B_pad * T_pad, E)
    emb_e = jnp.take(node_bf, ends_p, axis=0).reshape(B_pad * T_pad, E)
    # TODO(synk): nn.Dropout is identity in eval mode; not applied here.

    # ---- weight layout plumbing (done once in XLA, not per grid step) -------
    Wt = W.T.astype(jnp.bfloat16)                         # (3E, E)
    Ws, Wp, We = Wt[:E], Wt[E:2 * E], Wt[2 * E:]          # (E, E) each
    a2 = a.reshape(1, E).astype(jnp.float32)
    out_w_t = jnp.pad(out_w.T, ((0, 0), (0, O_pad - O))).astype(jnp.bfloat16)
    out_b2 = jnp.pad(out_b, (0, O_pad - O)).reshape(1, O_pad).astype(jnp.float32)

    rows = Bt * T_pad
    grid_spec = pltpu.PrefetchScalarGridSpec(
        num_scalar_prefetch=0,
        grid=(num_b_blocks, num_o_blocks),
        in_specs=[
            pl.BlockSpec((Bt, 1), lambda b, o: (b, 0)),          # lengths
            pl.BlockSpec((rows, E), lambda b, o: (b, 0)),        # emb_s (bf16)
            pl.BlockSpec((rows, E), lambda b, o: (b, 0)),        # emb_p (bf16)
            pl.BlockSpec((rows, E), lambda b, o: (b, 0)),        # emb_e (bf16)
            pl.BlockSpec((E, E), lambda b, o: (0, 0)),           # Ws
            pl.BlockSpec((E, E), lambda b, o: (0, 0)),           # Wp
            pl.BlockSpec((E, E), lambda b, o: (0, 0)),           # We
            pl.BlockSpec((1, E), lambda b, o: (0, 0)),           # a
            pl.BlockSpec((E, O_tile), lambda b, o: (0, o)),      # out_w^T tile
            pl.BlockSpec((1, O_tile), lambda b, o: (0, o)),      # out_b tile
        ],
        out_specs=pl.BlockSpec((Bt, O_tile), lambda b, o: (b, o)),
        scratch_shapes=[pltpu.VMEM((Bt, E), jnp.float32)],       # v accumulator
    )

    out = pl.pallas_call(
        functools.partial(code2vec_kernel, t_valid=T),
        out_shape=jax.ShapeDtypeStruct((B_pad, O_pad), jnp.float32),
        grid_spec=grid_spec,
        compiler_params=pltpu.CompilerParams(
            dimension_semantics=("parallel", "arbitrary"),
            vmem_limit_bytes=_vmem_limit_bytes(Bt, T_pad, E, O_tile),
        ),
    )(lens, emb_s, emb_p, emb_e, Ws, Wp, We, a2, out_w_t, out_b2)

    return out[:B, :O]


def init_params(key, nodes_dim, paths_dim, embed_dim, output_dim, padding_index=1):
    k = jax.random.split(key, 6)
    node_emb = jax.random.normal(k[0], (nodes_dim, embed_dim), jnp.float32)
    node_emb = node_emb.at[padding_index].set(0.0)   # padding_idx row zeroed
    path_emb = jax.random.normal(k[1], (paths_dim, embed_dim), jnp.float32)
    W = jax.random.normal(k[2], (embed_dim, 3 * embed_dim), jnp.float32)
    a = jax.random.normal(k[3], (embed_dim, 1), jnp.float32)
    lim = 1.0 / jnp.sqrt(embed_dim)
    out_w = jax.random.uniform(k[4], (output_dim, embed_dim), jnp.float32, -lim, lim)
    out_b = jax.random.uniform(k[5], (output_dim,), jnp.float32, -lim, lim)
    return {"node_embedding": node_emb, "path_embedding": path_emb,
            "W": W, "a": a, "out_w": out_w, "out_b": out_b}


def reference_forward(starts, paths, ends, length, params):
    """Pure-JAX replica of the torch forward (eval mode) for verification.

    Uses the same bf16 cast of the embeddings / W as the kernel (f32 acc) so
    the comparison tolerance can stay tight; softmax & final matmul are exact
    f32 here (kernel uses approx reciprocal + bf16 final matmul -> 5e-3 tol).
    """
    node_emb = params["node_embedding"].astype(jnp.bfloat16)
    path_emb = params["path_embedding"].astype(jnp.bfloat16)
    W, a = params["W"], params["a"]
    out_w, out_b = params["out_w"], params["out_b"]
    c = jnp.concatenate([jnp.take(node_emb, starts, axis=0),
                         jnp.take(path_emb, paths, axis=0),
                         jnp.take(node_emb, ends, axis=0)],
                        axis=2)                                       # (B,T,3E) bf16
    x = jnp.tanh(jnp.einsum("ef,btf->bte", W.astype(jnp.bfloat16), c,
                            preferred_element_type=jnp.float32))      # (B,T,E)
    z = jnp.einsum("bte,e->bt", x, a[:, 0])                           # (B,T)
    z = jax.nn.softmax(z, axis=1)[..., None]                          # (B,T,1)
    T = starts.shape[1]
    mask = (jnp.arange(T)[None, :, None] < length[:, None, None])
    v = jnp.sum(jnp.where(mask, z, 0.0) * x, axis=1)                  # (B,E)
    return v @ out_w.T + out_b


if __name__ == "__main__":
    B, T = 2, 8
    E = 32
    NODES, PATHS, OUT = 64, 64, 16

    key = jax.random.PRNGKey(0)
    kp, ks, kq, ke = jax.random.split(key, 4)
    params = init_params(kp, NODES, PATHS, E, OUT)

    starts = jax.random.randint(ks, (B, T), 0, NODES, dtype=jnp.int32)
    paths = jax.random.randint(kq, (B, T), 0, PATHS, dtype=jnp.int32)
    ends = jax.random.randint(ke, (B, T), 0, NODES, dtype=jnp.int32)
    length = jnp.array([5, 8], dtype=jnp.int32)

    out = code2vec_forward(starts, paths, ends, length, params)
    out = jax.block_until_ready(out)

    ref = reference_forward(starts, paths, ends, length, params)
    assert out.shape == (B, OUT)
    assert jnp.allclose(out, ref, atol=5e-3, rtol=5e-3), (out, ref)

    print("KERNEL_OK")
</pallas_src>

<mosaic_0001>
module attributes {stable_mosaic.version = 11 : i64} {
  func.func @code2vec_kernel(%arg0: i32, %arg1: i32, %arg2: memref<8x1xi32, #tpu.memory_space<vmem>>, %arg3: memref<64x32xbf16, #tpu.memory_space<vmem>>, %arg4: memref<64x32xbf16, #tpu.memory_space<vmem>>, %arg5: memref<64x32xbf16, #tpu.memory_space<vmem>>, %arg6: memref<32x32xbf16, #tpu.memory_space<vmem>>, %arg7: memref<32x32xbf16, #tpu.memory_space<vmem>>, %arg8: memref<32x32xbf16, #tpu.memory_space<vmem>>, %arg9: memref<1x32xf32, #tpu.memory_space<vmem>>, %arg10: memref<32x128xbf16, #tpu.memory_space<vmem>>, %arg11: memref<1x128xf32, #tpu.memory_space<vmem>>, %arg12: memref<8x128xf32, #tpu.memory_space<vmem>>, %arg13: memref<8x32xf32, #tpu.memory_space<vmem>>) attributes {dimension_semantics = [#tpu.dimension_semantics<parallel>, #tpu.dimension_semantics<arbitrary>], iteration_bounds = array<i64: 2, 1>, scalar_prefetch = 0 : i64, scratch_operands = 1 : i64, tpu.core_type = #tpu.core_type<tc>, window_params = [{transform_indices = @transform_0, window_bounds = array<i64: 8, 1>}, {transform_indices = @transform_1, window_bounds = array<i64: 64, 32>}, {transform_indices = @transform_2, window_bounds = array<i64: 64, 32>}, {transform_indices = @transform_3, window_bounds = array<i64: 64, 32>}, {pipeline_mode = #tpu.pipeline_mode<synchronous>, transform_indices = @transform_4, window_bounds = array<i64: 32, 32>}, {pipeline_mode = #tpu.pipeline_mode<synchronous>, transform_indices = @transform_5, window_bounds = array<i64: 32, 32>}, {pipeline_mode = #tpu.pipeline_mode<synchronous>, transform_indices = @transform_6, window_bounds = array<i64: 32, 32>}, {pipeline_mode = #tpu.pipeline_mode<synchronous>, transform_indices = @transform_7, window_bounds = array<i64: 1, 32>}, {transform_indices = @transform_8, window_bounds = array<i64: 32, 128>}, {transform_indices = @transform_9, window_bounds = array<i64: 1, 128>}, {transform_indices = @transform_10, window_bounds = array<i64: 8, 128>}]} {
    %c0_i32 = arith.constant 0 : i32
    %0 = arith.cmpi eq, %arg1, %c0_i32 : i32
    %1 = arith.extui %0 : i1 to i32
    %c0_i32_0 = arith.constant 0 : i32
    %2 = arith.cmpi ne, %1, %c0_i32_0 : i32
    scf.if %2 {
      %c0_8 = arith.constant 0 : index
      %c0_9 = arith.constant 0 : index
      %11 = vector.load %arg3[%c0_8, %c0_9] : memref<64x32xbf16, #tpu.memory_space<vmem>>, vector<64x32xbf16>
      %c0_10 = arith.constant 0 : index
      %c0_11 = arith.constant 0 : index
      %12 = vector.load %arg6[%c0_10, %c0_11] : memref<32x32xbf16, #tpu.memory_space<vmem>>, vector<32x32xbf16>
      %cst_12 = arith.constant dense<0.000000e+00> : vector<64x32xf32>
      %13 = tpu.matmul %11, %12, %cst_12 {dimension_numbers = #tpu.dot_dimension_numbers<[1], [0], [0], [1], [0, 0, 1, 1], [], []>} : vector<64x32xbf16>, vector<32x32xbf16>, vector<64x32xf32> -> vector<64x32xf32>
      %c0_13 = arith.constant 0 : index
      %c0_14 = arith.constant 0 : index
      %14 = vector.load %arg4[%c0_13, %c0_14] : memref<64x32xbf16, #tpu.memory_space<vmem>>, vector<64x32xbf16>
      %c0_15 = arith.constant 0 : index
      %c0_16 = arith.constant 0 : index
      %15 = vector.load %arg7[%c0_15, %c0_16] : memref<32x32xbf16, #tpu.memory_space<vmem>>, vector<32x32xbf16>
      %cst_17 = arith.constant dense<0.000000e+00> : vector<64x32xf32>
      %16 = tpu.matmul %14, %15, %cst_17 {dimension_numbers = #tpu.dot_dimension_numbers<[1], [0], [0], [1], [0, 0, 1, 1], [], []>} : vector<64x32xbf16>, vector<32x32xbf16>, vector<64x32xf32> -> vector<64x32xf32>
      %17 = arith.addf %13, %16 : vector<64x32xf32>
      %c0_18 = arith.constant 0 : index
      %c0_19 = arith.constant 0 : index
      %18 = vector.load %arg5[%c0_18, %c0_19] : memref<64x32xbf16, #tpu.memory_space<vmem>>, vector<64x32xbf16>
      %c0_20 = arith.constant 0 : index
      %c0_21 = arith.constant 0 : index
      %19 = vector.load %arg8[%c0_20, %c0_21] : memref<32x32xbf16, #tpu.memory_space<vmem>>, vector<32x32xbf16>
      %cst_22 = arith.constant dense<0.000000e+00> : vector<64x32xf32>
      %20 = tpu.matmul %18, %19, %cst_22 {dimension_numbers = #tpu.dot_dimension_numbers<[1], [0], [0], [1], [0, 0, 1, 1], [], []>} : vector<64x32xbf16>, vector<32x32xbf16>, vector<64x32xf32> -> vector<64x32xf32>
      %21 = arith.addf %17, %20 : vector<64x32xf32>
      %22 = math.tanh %21 : vector<64x32xf32>
      %23 = vector.shape_cast %22 : vector<64x32xf32> to vector<8x8x32xf32>
      %c0_23 = arith.constant 0 : index
      %c0_24 = arith.constant 0 : index
      %24 = vector.load %arg9[%c0_23, %c0_24] : memref<1x32xf32, #tpu.memory_space<vmem>>, vector<1x32xf32>
      %25 = vector.shape_cast %24 : vector<1x32xf32> to vector<1x1x32xf32>
      %26 = vector.broadcast %25 : vector<1x1x32xf32> to vector<8x8x32xf32>
      %27 = arith.mulf %23, %26 : vector<8x8x32xf32>
      %cst_25 = arith.constant dense<0.000000e+00> : vector<8x8xf32>
      %28 = vector.multi_reduction <add>, %27, %cst_25 [2] : vector<8x8x32xf32> to vector<8x8xf32>
      %29 = tpu.iota {dimensions = array<i32: 1>} : vector<8x8xi32>
      %c8_i32 = arith.constant 8 : i32
      %30 = vector.broadcast %c8_i32 : i32 to vector<8x8xi32>
      %31 = arith.cmpi slt, %29, %30 : vector<8x8xi32>
      %cst_26 = arith.constant -1.000000e+30 : f32
      %32 = vector.broadcast %cst_26 : f32 to vector<8x8xf32>
      %33 = arith.select %31, %28, %32 : vector<8x8xi1>, vector<8x8xf32>
      %cst_27 = arith.constant dense<0xFF800000> : vector<8xf32>
      %34 = vector.multi_reduction <maximumf>, %33, %cst_27 [1] : vector<8x8xf32> to vector<8xf32>
      %35 = vector.shape_cast %34 : vector<8xf32> to vector<8x1xf32>
      %36 = vector.broadcast %35 : vector<8x1xf32> to vector<8x8xf32>
      %37 = arith.subf %33, %36 : vector<8x8xf32>
      %38 = math.exp %37 : vector<8x8xf32>
      %cst_28 = arith.constant dense<0.000000e+00> : vector<8xf32>
      %39 = vector.multi_reduction <add>, %38, %cst_28 [1] : vector<8x8xf32> to vector<8xf32>
      %40 = vector.shape_cast %39 : vector<8xf32> to vector<8x1xf32>
      %41 = tpu.reciprocal %40 {approx = true} : vector<8x1xf32> -> vector<8x1xf32>
      %42 = vector.broadcast %41 : vector<8x1xf32> to vector<8x8xf32>
      %43 = arith.mulf %38, %42 : vector<8x8xf32>
      %c0_29 = arith.constant 0 : index
      %c0_30 = arith.constant 0 : index
      %44 = vector.load %arg2[%c0_29, %c0_30] : memref<8x1xi32, #tpu.memory_space<vmem>>, vector<8x1xi32>
      %45 = vector.broadcast %44 : vector<8x1xi32> to vector<8x8xi32>
      %46 = arith.cmpi slt, %29, %45 : vector<8x8xi32>
      %cst_31 = arith.constant 0.000000e+00 : f32
      %47 = vector.broadcast %cst_31 : f32 to vector<8x8xf32>
      %48 = arith.select %46, %43, %47 : vector<8x8xi1>, vector<8x8xf32>
      %49 = vector.shape_cast %48 : vector<8x8xf32> to vector<8x8x1xf32>
      %50 = vector.broadcast %49 : vector<8x8x1xf32> to vector<8x8x32xf32>
      %51 = arith.mulf %50, %23 : vector<8x8x32xf32>
      %cst_32 = arith.constant dense<0.000000e+00> : vector<8x32xf32>
      %52 = vector.multi_reduction <add>, %51, %cst_32 [1] : vector<8x8x32xf32> to vector<8x32xf32>
      %c0_33 = arith.constant 0 : index
      %c0_34 = arith.constant 0 : index
      %53 = vector.load %arg13[%c0_33, %c0_34] : memref<8x32xf32, #tpu.memory_space<vmem>>, vector<8x32xf32>
      tpu.vector_store %arg13[%c0_33, %c0_34], %52 {strides = array<i32>} : memref<8x32xf32, #tpu.memory_space<vmem>>, vector<8x32xf32>,
    } else {
    }
    %c0 = arith.constant 0 : index
    %c0_1 = arith.constant 0 : index
    %3 = vector.load %arg13[%c0, %c0_1] : memref<8x32xf32, #tpu.memory_space<vmem>>, vector<8x32xf32>
    %4 = arith.truncf %3 : vector<8x32xf32> to vector<8x32xbf16>
    %c0_2 = arith.constant 0 : index
    %c0_3 = arith.constant 0 : index
    %5 = vector.load %arg10[%c0_2, %c0_3] : memref<32x128xbf16, #tpu.memory_space<vmem>>, vector<32x128xbf16>
    %cst = arith.constant dense<0.000000e+00> : vector<8x128xf32>
    %6 = tpu.matmul %4, %5, %cst {dimension_numbers = #tpu.dot_dimension_numbers<[1], [0], [0], [1], [0, 0, 1, 1], [], []>} : vector<8x32xbf16>, vector<32x128xbf16>, vector<8x128xf32> -> vector<8x128xf32>
    %c0_4 = arith.constant 0 : index
    %c0_5 = arith.constant 0 : index
    %7 = vector.load %arg11[%c0_4, %c0_5] : memref<1x128xf32, #tpu.memory_space<vmem>>, vector<1x128xf32>
    %8 = vector.broadcast %7 : vector<1x128xf32> to vector<8x128xf32>
    %9 = arith.addf %6, %8 : vector<8x128xf32>
    %c0_6 = arith.constant 0 : index
    %c0_7 = arith.constant 0 : index
    %10 = vector.load %arg12[%c0_6, %c0_7] : memref<8x128xf32, #tpu.memory_space<vmem>>, vector<8x128xf32>
    tpu.vector_store %arg12[%c0_6, %c0_7], %9 {strides = array<i32>} : memref<8x128xf32, #tpu.memory_space<vmem>>, vector<8x128xf32>,
    return
  }
  func.func @transform_0(%arg0: i32, %arg1: i32) -> (i32, i32) {
    %c0_i32 = arith.constant 0 : i32
    %c0_i32_0 = arith.constant 0 : i32
    return %arg0, %c0_i32 : i32, i32
  }
  func.func @transform_1(%arg0: i32, %arg1: i32) -> (i32, i32) {
    %c0_i32 = arith.constant 0 : i32
    %c0_i32_0 = arith.constant 0 : i32
    return %arg0, %c0_i32 : i32, i32
  }
  func.func @transform_2(%arg0: i32, %arg1: i32) -> (i32, i32) {
    %c0_i32 = arith.constant 0 : i32
    %c0_i32_0 = arith.constant 0 : i32
    return %arg0, %c0_i32 : i32, i32
  }
  func.func @transform_3(%arg0: i32, %arg1: i32) -> (i32, i32) {
    %c0_i32 = arith.constant 0 : i32
    %c0_i32_0 = arith.constant 0 : i32
    return %arg0, %c0_i32 : i32, i32
  }
  func.func @transform_4(%arg0: i32, %arg1: i32) -> (i32, i32) {
    %c0_i32 = arith.constant 0 : i32
    %c0_i32_0 = arith.constant 0 : i32
    %c0_i32_1 = arith.constant 0 : i32
    return %c0_i32, %c0_i32_0 : i32, i32
  }
  func.func @transform_5(%arg0: i32, %arg1: i32) -> (i32, i32) {
    %c0_i32 = arith.constant 0 : i32
    %c0_i32_0 = arith.constant 0 : i32
    %c0_i32_1 = arith.constant 0 : i32
    return %c0_i32, %c0_i32_0 : i32, i32
  }
  func.func @transform_6(%arg0: i32, %arg1: i32) -> (i32, i32) {
    %c0_i32 = arith.constant 0 : i32
    %c0_i32_0 = arith.constant 0 : i32
    %c0_i32_1 = arith.constant 0 : i32
    return %c0_i32, %c0_i32_0 : i32, i32
  }
  func.func @transform_7(%arg0: i32, %arg1: i32) -> (i32, i32) {
    %c0_i32 = arith.constant 0 : i32
    %c0_i32_0 = arith.constant 0 : i32
    %c0_i32_1 = arith.constant 0 : i32
    return %c0_i32, %c0_i32_0 : i32, i32
  }
  func.func @transform_8(%arg0: i32, %arg1: i32) -> (i32, i32) {
    %c0_i32 = arith.constant 0 : i32
    %c0_i32_0 = arith.constant 0 : i32
    return %c0_i32, %arg1 : i32, i32
  }
  func.func @transform_9(%arg0: i32, %arg1: i32) -> (i32, i32) {
    %c0_i32 = arith.constant 0 : i32
    %c0_i32_0 = arith.constant 0 : i32
    return %c0_i32, %arg1 : i32, i32
  }
  func.func @transform_10(%arg0: i32, %arg1: i32) -> (i32, i32) {
    %c0_i32 = arith.constant 0 : i32
    return %arg0, %arg1 : i32, i32
  }
}

</mosaic_0001>

<bundles_post_ra>
// kernel: tpu_custom_call.1
= control target key start
LH: loop header
LB: loop body
LE: loop exit
PB: predicated region body
PF: predicated region fallthrough
CT: control target
= control target key end

     0   :  { %s1736_s0 = inlined_call_operand.vmem [shape: s32[16,1], index: 0, kind: input, shape index: {}]   ;;  %s1737_s1 = inlined_call_operand.vmem [shape: bf16[128,32], index: 1, kind: input, shape index: {}]   ;;  %s1738_s2 = inlined_call_operand.vmem [shape: bf16[128,32], index: 2, kind: input, shape index: {}]   ;;  %s1739_s3 = inlined_call_operand.vmem [shape: bf16[128,32], index: 3, kind: input, shape index: {}]   ;;  %s1740_s4 = inlined_call_operand.vmem [shape: bf16[32,32], index: 4, kind: input, shape index: {}]   ;;  %s1741_s5 = inlined_call_operand.vmem [shape: bf16[32,32], index: 5, kind: input, shape index: {}]   ;;  %s1742_s6 = inlined_call_operand.vmem [shape: bf16[32,32], index: 6, kind: input, shape index: {}]   ;;  %s1743_s7 = inlined_call_operand.vmem [shape: f32[1,32], index: 7, kind: input, shape index: {}]   ;;  %s1744_s8 = inlined_call_operand.vmem [shape: bf16[32,128], index: 8, kind: input, shape index: {}]   ;;  %s1745_s9 = inlined_call_operand.vmem [shape: f32[1,128], index: 9, kind: input, shape index: {}]   ;;  %s1746_s10 = inlined_call_operand.hbm [shape: f32[16,128], index: 10, kind: output, shape index: {}]  }
   0x1   :  { %1749 = sst [smem:[#allocation8_spill]] %s1741_s5 }
   0x2   :  { %15 = vsyncpa [#allocation4], 0 }
   0x3   :  { %17 = vsyncpa [#allocation4 + $0x1], 0  ;;  %s1507_s13 = smov 0   ;;  %s1509_s14 = smov 0  }
   0x4   :  { %s1511_s15 = smov 0   ;;  %s1513_s16 = smov 0  }
   0x5   :  { %s1515_s17 = smov 0   ;;  %s1517_s18 = smov 0  }
   0x6 LB: > { %1750 = sst [smem:[#allocation6_spill]] %s1445_s17  ;;  %s1157_s19 = sadd.s32 4294967295, %s1449_s18   ;;  %s1449_s18 = sphi %s1517_s18, %s23_s18   ;;  %s1445_s17 = sphi %s1515_s17, %s1756_s17   ;;  %s1441_s16 = sphi %s1513_s16, %s1755_s16   ;;  %s1437_s15 = sphi %s1511_s15, %s1759_s15   ;;  %s1433_s14 = sphi %s1509_s14, %s1758_s14   ;;  %s1429_s13 = sphi %s1507_s13, %s1757_s13  }
   0x7   : > { %s1158_s20 = sadd.s32 4294967294, %s1449_s18   ;;  %s35_s21 = sadd.s32 1, %s1445_s17 }
   0x8   : > { %s284_s22 = sadd.s32 1, %s1437_s15  ;;  %p37_p0 = scmp.ge.s32.totalorder %s35_s21, 2 }
   0x9   : > { %p294_p1 = scmp.ne.s32.totalorder %s1437_s15, %s1433_s14  ;;  %p295_p2 = scmp.eq.s32.totalorder %s1157_s19, 1 }
   0xa   : > { %p300_p3 = scmp.ne.s32.totalorder %s1433_s14, %s1429_s13  ;;  %s1761_s21 = smov (%p37_p0, %s35_s21), 0 }
   0xb   : > { %1751 = sst [smem:[#allocation7_spill]] %s1761_s21  ;;  %p1547_p4 = por %p295_p2, %p294_p1 }
   0xc   : > { %p301_p5 = scmp.eq.s32.totalorder %s1158_s20, 1  ;;  %s279_s24 = ssub.s32 %s1445_s17, %s1761_s21 }
   0xd   : > { %p1163_p6 = scmp.ge.s32.totalorder %s1449_s18, 1  ;;  %p282_p7 = scmp.eq.s32.totalorder %s279_s24, 0 }
   0xe   : > { %p1554_p8 = por %p301_p5, %p300_p3  ;;  %p378_p9 = scmp.lt.s32.totalorder %s1449_s18, 3 }
   0xf   : > { %s1560_s26 = scalar_select %p282_p7, %s1437_s15, %s284_s22  }
  0x10   : > { %p379_p10 = pnand %p1163_p6, %p378_p9 }
  0x11   : > { %s1754_s5 = sld [smem:[#allocation8_spill]] (!%p379_p10)  ;;  %s1572_s19 = sshll.u32 (!%p379_p10), %s1441_s16, 3 }
  0x12   : > { %382 = sbr.rel (%p379_p10) target bundleno = 907 (0x38b), region = 60  ;;  %p442_p11 = scmp.lt.s32.totalorder (!%p379_p10), %s1572_s19, 15 }
  0x13   : > { %p437_p12 = scmp.lt.s32.totalorder (!%p379_p10), %s1441_s16, 1  ;;  %s434_s24 = sand.u32 (!%p379_p10), 1, %s1433_s14  }
  0x14   : > { %s1164_s27 = sshll.u32 (!%p379_p10), %s434_s24, 3  ;;  %s1021_s21 = scalar_lea.hbm (!%p379_p10), %s1746_s10, %s1572_s19 }
  0x15   : > { %s1010_s12 = scalar_lea.sflag (!%p379_p10), [#allocation4], %s434_s24 }
  0x17   : > { %v1280_v0 = vld [vmem:[%s1754_s5 + $0x8] sm:$0xff]  ;;  %v1279_v3 = vld [vmem:[%s1754_s5] sm:$0xff]  ;;  %s443_s30 = scalar_select %p442_p11, %s1572_s19, 15  ;;  %vm527_vm0 = vcmask 261120   ;;  %vm798_vm1 = vcmask 1041409   ;;  %vm800_vm2 = vcmask 1042434  }
  0x18   : > { %v1274_v1 = vld [vmem:[%s1740_s4 + $0x8] sm:$0xff]  ;;  %546 = vmatpush.bf16.msra.mxu0 %v1280_v0  ;;  %v1273_v4 = vld [vmem:[%s1740_s4] sm:$0xff]  ;;  %vm802_vm3 = vcmask 1043459   ;;  %vm804_vm4 = vcmask 1044484   ;;  %vm806_vm5 = vcmask 1045509   ;;  %vm808_vm6 = vcmask 1046534  }
  0x19   : > { %v1286_v2 = vld [vmem:[%s1742_s6 + $0x8] sm:$0xff]  ;;  %619 = vmatpush.bf16.msra.mxu1 %v1274_v1  ;;  %v1285_v5 = vld [vmem:[%s1742_s6] sm:$0xff]  ;;  %s1167_s11 = sshll.u32 %s443_s30, 2  ;;  %vm810_vm7 = vcmask 1047559   ;;  %vm814_vm9 = vcmask 64512   ;;  %s1763_s16 = smov (!%p437_p12, %s1441_s16), 1 }
  0x1a   : > { %704 = vmatpush.bf16.msra.mxu2 %v1286_v2  ;;  %s451_s22 = scalar_lea.vmem %s1738_s2, %s1167_s11  ;;  %s445_s17 = scalar_lea.vmem %s1737_s1, %s1167_s11  ;;  %v1609_v25 = vld [vmem:[%s1743_s7] ss:$0 sm:$0xff] }
  0x1b   : > { %v1275_v6 = vld [vmem:[%s451_s22] sm:$0xff]  ;;  %s457_s28 = scalar_lea.vmem %s1739_s3, %s1167_s11  ;;  %v1276_v9 = vld [vmem:[%s451_s22 + $0x8] sm:$0xff]  ;;  %v1277_v12 = vld [vmem:[%s451_s22 + $0x10] sm:$0xff]  ;;  %s436_s30 = scalar_lea.vmem [#allocation3], %s1164_s27 }
  0x1c   : > { %547 = vmatpush.bf16.msra.mxu0 %v1279_v3  ;;  %v1269_v7 = vld [vmem:[%s445_s17] sm:$0xff]  ;;  %v1270_v10 = vld [vmem:[%s445_s17 + $0x8] sm:$0xff]  ;;  %v1271_v13 = vld [vmem:[%s445_s17 + $0x10] sm:$0xff]  ;;  %s1391_s5 = scalar_lea.hbm %s1746_s10, 16 }
  0x1d   : > { %620 = vmatpush.bf16.msra.mxu1 %v1273_v4  ;;  %v1281_v8 = vld [vmem:[%s457_s28] sm:$0xff]  ;;  %v1282_v11 = vld [vmem:[%s457_s28 + $0x8] sm:$0xff]  ;;  %v1283_v14 = vld [vmem:[%s457_s28 + $0x10] sm:$0xff] }
  0x1e   : > { %705 = vmatpush.bf16.msra.mxu2 %v1285_v5  ;;  %v1278_v15 = vld [vmem:[%s451_s22 + $0x18] sm:$0xff] }
  0x1f   : > { %1196 = vmatmul.msk.bf16.vlgmr.msra.gmra.mxu0 %vm527_vm0, %v1275_v6  ;;  %v1272_v16 = vld [vmem:[%s445_s17 + $0x18] sm:$0xff]  ;;  %s1165_s17 = sshll.u32 %s1763_s16, 3  ;;  %s1025_s16 = sshll.u32 %s1021_s21, 4  ;;  %s1026_s16 = int_to_ptr.hbm [resolvable:$true] %s1025_s16 }
  0x20   : > { %1224 = vmatmul.msk.bf16.vlgmr.msra.gmra.mxu1 %vm527_vm0, %v1269_v7  ;;  %v1284_v17 = vld [vmem:[%s457_s28 + $0x18] sm:$0xff]  ;;  %s440_s11 = scalar_lea.vmem %s1736_s0, %s1165_s17  ;;  %s1385_s20 = sshra.s32 %s1026_s16, 4  ;;  %s1386_s20 = int_to_ptr.hbm [resolvable:$true] %s1385_s20 }
  0x21   : > { %1252 = vmatmul.msk.bf16.vlgmr.msra.gmra.mxu2 %vm527_vm0, %v1281_v8  ;;  %s1387_s22 = scalar_lea.hbm %s1386_s20, 8  ;;  %p1392_p2 = scmp.lt.s32.totalorder %s1386_s20, %s1746_s10 }
  0x22   : > { %p1388_p13 = scmp.ne.s32.totalorder %s1386_s20, %s1387_s22  ;;  %p1393_p3 = scmp.lt.s32.totalorder %s1391_s5, %s1387_s22 }
  0x24   : > { %p1389_p0 = pnand %p1388_p13, %p1547_p4  ;;  %p1394_p5 = por %p1393_p3, %p1392_p2 }
  0x26   : > { %p1390_p1 = pneg %p1389_p0 }
  0x28   : > { %p1395_p6 = pnand %p1394_p5, %p1390_p1 }
  0x2f   : > { %1197 = vmatmul.msk.bf16.gmra.mxu0 %vm527_vm0, %v1276_v9 }
  0x30   : > { %1225 = vmatmul.msk.bf16.gmra.mxu1 %vm527_vm0, %v1270_v10 }
  0x31   : > { %1253 = vmatmul.msk.bf16.gmra.mxu2 %vm527_vm0, %v1282_v11 }
  0x3f   : > { %1198 = vmatmul.msk.bf16.gmra.mxu0 %vm527_vm0, %v1277_v12 }
  0x40   : > { %1226 = vmatmul.msk.bf16.gmra.mxu1 %vm527_vm0, %v1271_v13 }
  0x41   : > { %1254 = vmatmul.msk.bf16.gmra.mxu2 %vm527_vm0, %v1283_v14 }
  0x4f   : > { %1199 = vmatmul.msk.bf16.gmra.mxu0 %vm527_vm0, %v1278_v15 }
  0x50   : > { %1227 = vmatmul.msk.bf16.gmra.mxu1 %vm527_vm0, %v1272_v16 }
  0x51   : > { %1255 = vmatmul.msk.bf16.gmra.mxu2 %vm527_vm0, %v1284_v17 }
  0x9c   : > { %v549_v18 = vpop.f32.mrf.mxu0 }
  0x9d   : > { %v622_v19 = vpop.f32.mrf.mxu1 }
  0x9e   : > { %v623_v20 = vadd.f32 %v622_v19, %v549_v18 }
  0xa4   : > { %v707_v21 = vpop.f32.mrf.mxu2  ;;  %v551_v23 = vpop.f32.mrf.mxu0 }
  0xa5   : > { %v727_v22 = vadd.f32 %v707_v21, %v623_v20  ;;  %v624_v24 = vpop.f32.mrf.mxu1 }
  0xa6   : > { %v625_v26 = vadd.f32 %v624_v24, %v551_v23 }
  0xa7   : > { %1351 = vtanh.f32 %v727_v22  ;;  %v779_v22 = vlaneseq }
  0xa9   : > { %v780_v24 = vand.u32 127, %v779_v22 }
  0xab   : > { %vm781_vm8 = vcmp.lt.s32.totalorder %v780_v24, 8 }
  0xac   : > { %v709_v27 = vpop.f32.mrf.mxu2  ;;  %v554_v30 = vpop.f32.mrf.mxu0 }
  0xad   : > { %v1611_v28 = vpop.eup %1351  ;;  %v728_v29 = vadd.f32 %v709_v27, %v625_v26  ;;  %v627_v31 = vpop.f32.mrf.mxu1 }
  0xae   : > { %v747_v32 = vmul.f32 %v1611_v28, %v1609_v25  ;;  %v628_v34 = vadd.f32 %v627_v31, %v554_v30 }
  0xaf   : > { %1353 = vtanh.f32 %v728_v29 }
  0xb0   : > { %v755_v33 = vsel %vm527_vm0, %v747_v32, 0.0 }
  0xb1   : > { %756 = vadd.xlane.f32.xlu0 %v755_v33 }
  0xb4   : > { %v712_v35 = vpop.f32.mrf.mxu2  ;;  %v556_v38 = vpop.f32.mrf.mxu0 }
  0xb5   : > { %v1616_v36 = vpop.eup %1353  ;;  %v729_v37 = vadd.f32 %v712_v35, %v628_v34  ;;  %v629_v39 = vpop.f32.mrf.mxu1 }
  0xb6   : > { %v748_v40 = vmul.f32 %v1616_v36, %v1609_v25  ;;  %v630_v42 = vadd.f32 %v629_v39, %v556_v38 }
  0xb7   : > { %1355 = vtanh.f32 %v729_v37 }
  0xb8   : > { %v758_v41 = vsel %vm527_vm0, %v748_v40, 0.0 }
  0xb9   : > { %759 = vadd.xlane.f32.xlu0 %v758_v41 }
  0xbc   : > { %v714_v43 = vpop.f32.mrf.mxu2  ;;  %v559_v46 = vpop.f32.mrf.mxu0 }
  0xbd   : > { %v1621_v44 = vpop.eup %1355  ;;  %v730_v45 = vadd.f32 %v714_v43, %v630_v42  ;;  %v632_v47 = vpop.f32.mrf.mxu1 }
  0xbe   : > { %v749_v48 = vmul.f32 %v1621_v44, %v1609_v25  ;;  %v633_v50 = vadd.f32 %v632_v47, %v559_v46 }
  0xbf   : > { %1357 = vtanh.f32 %v730_v45 }
  0xc0   : > { %v761_v49 = vsel %vm527_vm0, %v749_v48, 0.0 }
  0xc1   : > { %762 = vadd.xlane.f32.xlu1 %v761_v49  ;;  %v826_v49 = vld [vmem:[%s440_s11] sm:$0xff]  ;;  %s1023_s11 = sshll.u32 %s436_s30, 4  ;;  %s1024_s11 = int_to_ptr.vmem [resolvable:$true] %s1023_s11 }
  0xc4   : > { %v717_v51 = vpop.f32.mrf.mxu2  ;;  %v561_v54 = vpop.f32.mrf.mxu0 }
  0xc5   : > { %v1626_v52 = vpop.eup %1357  ;;  %v731_v53 = vadd.f32 %v717_v51, %v633_v50  ;;  %v634_v55 = vpop.f32.mrf.mxu1  ;;  %v1451_v50 = vmov 0  }
  0xc6   : > { %v750_v56 = vmul.f32 %v1626_v52, %v1609_v25  ;;  %v635_v58 = vadd.f32 %v634_v55, %v561_v54  ;;  %1345 = vset.pattern.permute.xlu1 %v1451_v50 }
  0xc7   : > { %1359 = vtanh.f32 %v731_v53 }
  0xc8   : > { %v764_v57 = vsel %vm527_vm0, %v750_v56, 0.0 }
  0xc9   : > { %765 = vadd.xlane.f32.xlu1 %v764_v57  ;;  %v834_v57 = vshrl.u32 %v779_v22, 7 }
  0xcb   : > { %1347 = vset.pattern.permute.xlu0 %v834_v57  ;;  %1346 = vset.pattern.permute.xlu2 %v834_v57 }
  0xcc   : > { %v719_v59 = vpop.f32.mrf.mxu2  ;;  %v564_v62 = vpop.f32.mrf.mxu0 }
  0xcd   : > { %v1631_v60 = vpop.eup %1359  ;;  %v732_v61 = vadd.f32 %v719_v59, %v635_v58  ;;  %v637_v63 = vpop.f32.mrf.mxu1 }
  0xce   : > { %v751_v0 = vmul.f32 %v1631_v60, %v1609_v25  ;;  %v638_v2 = vadd.f32 %v637_v63, %v564_v62 }
  0xcf   : > { %1361 = vtanh.f32 %v732_v61 }
  0xd0   : > { %v767_v1 = vsel %vm527_vm0, %v751_v0, 0.0 }
  0xd1   : > { %768 = vadd.xlane.f32.xlu2 %v767_v1 }
  0xd4   : > { %v722_v3 = vpop.f32.mrf.mxu2  ;;  %v566_v7 = vpop.f32.mrf.mxu0 }
  0xd5   : > { %v1636_v4 = vpop.eup %1361  ;;  %v733_v5 = vadd.f32 %v722_v3, %v638_v2  ;;  %v639_v8 = vpop.f32.mrf.mxu1 }
  0xd6   : > { %v752_v6 = vmul.f32 %v1636_v4, %v1609_v25  ;;  %v640_v10 = vadd.f32 %v639_v8, %v566_v7 }
  0xd7   : > { %1363 = vtanh.f32 %v733_v5 }
  0xd8   : > { %v770_v9 = vsel %vm527_vm0, %v752_v6, 0.0 }
  0xd9   : > { %771 = vadd.xlane.f32.xlu2 %v770_v9 }
  0xdc   : > { %v724_v11 = vpop.f32.mrf.mxu2 }
  0xdd   : > { %v1641_v12 = vpop.eup %1363  ;;  %v734_v13 = vadd.f32 %v724_v11, %v640_v10 }
  0xde   : > { %v753_v14 = vmul.f32 %v1641_v12, %v1609_v25 }
  0xdf   : > { %1365 = vtanh.f32 %v734_v13 }
  0xe0   : > { %v773_v15 = vsel %vm527_vm0, %v753_v14, 0.0 }
  0xe1   : > { %774 = vadd.xlane.f32.xlu0 %v773_v15 }
  0xe5   : > { %v1646_v16 = vpop.eup %1365 }
  0xe6   : > { %v754_v17 = vmul.f32 %v1646_v16, %v1609_v25 }
  0xe8   : > { %v776_v18 = vsel %vm527_vm0, %v754_v17, 0.0 }
  0xe9   : > { %777 = vadd.xlane.f32.xlu1 %v776_v18 }
 0x102   : > { %828 = vperm.xlu1 %1345, %v826_v49  }
 0x10a   : > { %1348 = vset.pattern.permute.xlu1 %v834_v57 }
 0x124   : > { %v757_v19 = vpop.xlane.xlu0 %756 }
 0x125   : > { %v790_v31 = vperm.slane %v757_v19, %v780_v24 }
 0x12c   : > { %v760_v23 = vpop.xlane.xlu0 %759 }
 0x12d   : > { %v791_v27 = vperm.slane %v760_v23, %v780_v24 }
 0x12f   : > { %v799_v34 = vsel %vm798_vm1, %v791_v27, %v790_v31 }
 0x134   : > { %v763_v20 = vpop.xlane.xlu1 %762 }
 0x135   : > { %v792_v29 = vperm.slane %v763_v20, %v780_v24 }
 0x137   : > { %v801_v37 = vsel %vm800_vm2, %v792_v29, %v799_v34 }
 0x13c   : > { %v766_v26 = vpop.xlane.xlu1 %765 }
 0x13d   : > { %v793_v32 = vperm.slane %v766_v26, %v780_v24 }
 0x13f   : > { %v803_v39 = vsel %vm802_vm3, %v793_v32, %v801_v37 }
 0x144   : > { %v769_v21 = vpop.xlane.xlu2 %768 }
 0x145   : > { %v794_v25 = vperm.slane %v769_v21, %v780_v24 }
 0x147   : > { %v805_v40 = vsel %vm804_vm4, %v794_v25, %v803_v39 }
 0x14c   : > { %v772_v30 = vpop.xlane.xlu2 %771 }
 0x14d   : > { %v795_v35 = vperm.slane %v772_v30, %v780_v24 }
 0x14f   : > { %v807_v42 = vsel %vm806_vm5, %v795_v35, %v805_v40 }
 0x154   : > { %v775_v33 = vpop.xlane.xlu0 %774 }
 0x155   : > { %v796_v38 = vperm.slane %v775_v33, %v780_v24 }
 0x157   : > { %v809_v45 = vsel %vm808_vm6, %v796_v38, %v807_v42 }
 0x15c   : > { %v778_v41 = vpop.xlane.xlu1 %777 }
 0x15d   : > { %v797_v43 = vperm.slane %v778_v41, %v780_v24 }
 0x15f   : > { %v811_v46 = vsel %vm810_vm7, %v797_v43, %v809_v45 }
 0x160   : > { %v813_v47 = vsel %vm781_vm8, %v811_v46, -1e+30 }
 0x161   : > { %v815_v48 = vsel %vm814_vm9, %v813_v47, -inf }
 0x162   : > { %816 = vmax.xlane.f32.xlu2 %v815_v48 }
 0x174   : > { %v829_v59 = vpop.permute.xlu1 %828 }
 0x175   : > { %vm830_vm10 = vcmp.lt.s32.totalorder %v780_v24, %v829_v59 }
 0x1d5   : > { %v817_v51 = vpop.xlane.xlu2 %816 }
 0x1d6   : > { %v818_v53 = vsub.f32 %v813_v47, %v817_v51 }
 0x1d8   : > { %v819_v54 = vmul.f32 1.442695, %v818_v53 }
 0x1da   : > { %1367 = vpow2.f32 %v819_v54 }
 0x1e0   : > { %v1368_v55 = vpop.eup %1367 }
 0x1e1   : > { %v821_v56 = vsel %vm814_vm9, %v1368_v55, 0.0 }
 0x1e2   : > { %822 = vadd.xlane.f32.xlu0 %v821_v56 }
 0x255   : > { %v823_v58 = vpop.xlane.xlu0 %822 }
 0x256   : > { %1369 = vrcp.f32 %v823_v58 }
 0x25c   : > { %v1370_v61 = vpop.eup %1369 }
 0x25d   : > { %v825_v62 = vmul.f32 %v1370_v61, %v1368_v55 }
 0x25f   : > { %v831_v63 = vsel %vm830_vm10, %v825_v62, 0.0 }
 0x260   : > { %v853_v0 = vperm.slane %v831_v63, 3  ;;  %v839_v1 = vperm.slane %v831_v63, 1  ;;  %v832_v2 = vperm.slane %v831_v63, 0  ;;  %v867_v3 = vperm.slane %v831_v63, 5 }
 0x261   : > { %v846_v5 = vperm.slane %v831_v63, 2  ;;  %v881_v6 = vperm.slane %v831_v63, 7  ;;  %v860_v7 = vperm.slane %v831_v63, 4  ;;  %v874_v8 = vperm.slane %v831_v63, 6 }
 0x262   : > { %858 = vperm.xlu1 %1348, %v853_v0   ;;  %844 = vperm.xlu0 %1347, %v839_v1  }
 0x263   : > { %837 = vperm.xlu2 %1346, %v832_v2  }
 0x26a   : > { %872 = vperm.xlu1 %1348, %v867_v3  }
 0x26b   : > { %851 = vperm.xlu2 %1346, %v846_v5  }
 0x272   : > { %886 = vperm.xlu1 %1348, %v881_v6  }
 0x273   : > { %865 = vperm.xlu2 %1346, %v860_v7  }
 0x27b   : > { %879 = vperm.xlu2 %1346, %v874_v8  }
 0x2bd   : > { %v838_v9 = vpop.permute.xlu2 %837 }
 0x2be   : > { %v888_v11 = vmul.f32 %v1611_v28, %v838_v9  ;;  %v1288_v28 = vld [vmem:[%s1744_s8 + $0x8] sm:$0xff] }
 0x2bf   : > { %1001 = vmatpush.bf16.msra.mxu3 %v1288_v28 }
 0x2c0   : > { %v896_v14 = vsel %vm527_vm0, %v888_v11, 0.0 }
 0x2c1   : > { %v897_v17 = vrot.slane %v896_v14, 4 }
 0x2c3   : > { %v898_v21 = vadd.f32 %v897_v17, %v896_v14 }
 0x2c5   : > { %v852_v10 = vpop.permute.xlu2 %851 }
 0x2c6   : > { %v890_v13 = vmul.f32 %v1621_v44, %v852_v10 }
 0x2c8   : > { %v910_v18 = vsel %vm527_vm0, %v890_v13, 0.0 }
 0x2c9   : > { %v911_v20 = vrot.slane %v910_v18, 4 }
 0x2cb   : > { %v912_v30 = vadd.f32 %v911_v20, %v910_v18 }
 0x2cd   : > { %v866_v15 = vpop.permute.xlu2 %865  ;;  %v913_v38 = vrot.slane %v912_v30, 2 }
 0x2ce   : > { %v892_v19 = vmul.f32 %v1631_v60, %v866_v15 }
 0x2cf   : > { %v914_v47 = vadd.f32 %v913_v38, %v912_v30  ;;  %v1350_v30 = vld [vmem:[%s1745_s9] ss:$0 sm:$0xff] }
 0x2d0   : > { %v924_v44 = vsel %vm527_vm0, %v892_v19, 0.0 }
 0x2d1   : > { %v925_v25 = vrot.slane %v924_v44, 4  ;;  %v915_v58 = vrot.slane %v914_v47, 1 }
 0x2d3   : > { %v926_v41 = vadd.f32 %v925_v25, %v924_v44  ;;  %v916_v5 = vadd.f32 %v915_v58, %v914_v47 }
 0x2d4   : > { %v859_v22 = vpop.permute.xlu1 %858  ;;  %v845_v23 = vpop.permute.xlu0 %844 }
 0x2d5   : > { %v891_v24 = vmul.f32 %v1626_v52, %v859_v22  ;;  %v889_v26 = vmul.f32 %v1616_v36, %v845_v23  ;;  %v880_v27 = vpop.permute.xlu2 %879  ;;  %v1287_v52 = vld [vmem:[%s1744_s8] sm:$0xff]  ;;  %v899_v36 = vrot.slane %v898_v21, 2  ;;  %v927_v53 = vrot.slane %v926_v41, 2 }
 0x2d6   : > { %v894_v29 = vmul.f32 %v1641_v12, %v880_v27  ;;  %1002 = vmatpush.bf16.msra.mxu3 %v1287_v52 }
 0x2d7   : > { %v917_v60 = vsel %vm527_vm0, %v891_v24, 0.0  ;;  %v903_v31 = vsel %vm527_vm0, %v889_v26, 0.0  ;;  %v900_v12 = vadd.f32 %v899_v36, %v898_v21  ;;  %v928_v63 = vadd.f32 %v927_v53, %v926_v41 }
 0x2d8   : > { %v918_v32 = vrot.slane %v917_v60, 4  ;;  %v904_v33 = vrot.slane %v903_v31, 4  ;;  %v938_v37 = vsel %vm527_vm0, %v894_v29, 0.0 }
 0x2d9   : > { %v939_v42 = vrot.slane %v938_v37, 4  ;;  %v901_v49 = vrot.slane %v900_v12, 1  ;;  %v929_v9 = vrot.slane %v928_v63, 1 }
 0x2da   : > { %v919_v34 = vadd.f32 %v918_v32, %v917_v60  ;;  %v905_v35 = vadd.f32 %v904_v33, %v903_v31 }
 0x2db   : > { %v940_v54 = vadd.f32 %v939_v42, %v938_v37  ;;  %v902_v59 = vadd.f32 %v901_v49, %v900_v12  ;;  %v930_v18 = vadd.f32 %v929_v9, %v928_v63 }
 0x2dc   : > { %v906_v39 = vrot.slane %v905_v35, 2  ;;  %v873_v40 = vpop.permute.xlu1 %872  ;;  %v920_v45 = vrot.slane %v919_v34, 2 }
 0x2dd   : > { %v893_v43 = vmul.f32 %v1636_v4, %v873_v40  ;;  %v941_v0 = vrot.slane %v940_v54, 2 }
 0x2de   : > { %v907_v46 = vadd.f32 %v906_v39, %v905_v35  ;;  %v921_v55 = vadd.f32 %v920_v45, %v919_v34 }
 0x2df   : > { %v931_v48 = vsel %vm527_vm0, %v893_v43, 0.0  ;;  %v942_v11 = vadd.f32 %v941_v0, %v940_v54 }
 0x2e0   : > { %v908_v50 = vrot.slane %v907_v46, 1  ;;  %v932_v51 = vrot.slane %v931_v48, 4  ;;  %v922_v1 = vrot.slane %v921_v55, 1 }
 0x2e1   : > { %v943_v19 = vrot.slane %v942_v11, 1 }
 0x2e2   : > { %v909_v56 = vadd.f32 %v908_v50, %v907_v46  ;;  %v933_v57 = vadd.f32 %v932_v51, %v931_v48  ;;  %v923_v13 = vadd.f32 %v922_v1, %v921_v55 }
 0x2e3   : > { %v944_v24 = vadd.f32 %v943_v19, %v942_v11 }
 0x2e4   : > { %v934_v61 = vrot.slane %v933_v57, 2  ;;  %v887_v62 = vpop.permute.xlu1 %886  ;;  %v960_v2 = vsel %vm798_vm1, %v909_v56, %v902_v59 }
 0x2e5   : > { %v895_v4 = vmul.f32 %v1646_v16, %v887_v62  ;;  %v961_v10 = vsel %vm800_vm2, %v916_v5, %v960_v2 }
 0x2e6   : > { %v935_v3 = vadd.f32 %v934_v61, %v933_v57  ;;  %v962_v17 = vsel %vm802_vm3, %v923_v13, %v961_v10 }
 0x2e7   : > { %v945_v6 = vsel %vm527_vm0, %v895_v4, 0.0  ;;  %v963_v21 = vsel %vm804_vm4, %v930_v18, %v962_v17 }
 0x2e8   : > { %v936_v7 = vrot.slane %v935_v3, 1  ;;  %v946_v8 = vrot.slane %v945_v6, 4 }
 0x2ea   : > { %v947_v14 = vadd.f32 %v946_v8, %v945_v6  ;;  %v937_v15 = vadd.f32 %v936_v7, %v935_v3 }
 0x2ec   : > { %v948_v16 = vrot.slane %v947_v14, 2  ;;  %v964_v22 = vsel %vm806_vm5, %v937_v15, %v963_v21 }
 0x2ed   : > { %v965_v27 = vsel %vm808_vm6, %v944_v24, %v964_v22 }
 0x2ee   : > { %v949_v20 = vadd.f32 %v948_v16, %v947_v14 }
 0x2f0   : > { %v950_v23 = vrot.slane %v949_v20, 1 }
 0x2f2   : > { %v951_v26 = vadd.f32 %v950_v23, %v949_v20 }
 0x2f4   : > { %v966_v28 = vsel %vm810_vm7, %v951_v26, %v965_v27 }
 0x2f5   : > { %968 = vst.msk [vmem:[#allocation2] sm:$0xff] %vm527_vm0, %v966_v28 }
 0x2fc   : > { %v969_v44 = vld [vmem:[#allocation2] sm:$0xff] }
 0x2fd   : > { %v970_v29 = vpack.c.bf16 %v969_v44, %v969_v44 }
 0x2ff   : > { %1264 = vmatmul.msk.bf16.vlgmr.msra.gmra.mxu3 %vm527_vm0, %v970_v29 }
 0x382   : > { %v1004_v60 = vpop.f32.mrf.mxu3 }
 0x383   : > { %v1005_v31 = vadd.f32 %v1350_v30, %v1004_v60 }
 0x385   : > { %1008 = vst [vmem:[%s436_s30] sm:$0xff] %v1005_v31 }
 0x386   : > { %1398 = shalt.err (!%p1395_p6)
}
 0x387   : > { %1289 = dma.vmem_to_hbm [thread:$0]  (%p1547_p4), %s1024_s11, 128, %s1026_s16, %s1010_s12  }
 0x38a   : > { %v1006_v52 = vpop.f32.mrf.mxu3 }
 0x38b PF: > { %p1295_p7 = scmp.ge.s32.totalorder %s1449_s18, 2  ;;  %s1037_s24 = sand.u32 1, %s1429_s13  }
 0x38c   : > { %s1038_s21 = scalar_lea.sflag [#allocation4], %s1037_s24 }
 0x38d   : > { %p1292_p9 = pnand %p1295_p7, %p1554_p8 }
 0x38f   : > { %p1293_p10 = pneg %p1292_p9 }
 0x391   : > { %1424 = dma.done.wait (%p1293_p10), %s1038_s21, 128  }
 0x392   : > { %1426 = vsyncadd (%p1293_p10), %s1038_s21, 4294967168  ;;  %s23_s18 = sadd.s32 1, %s1449_s18   ;;  %s1755_s16 = sld [smem:[#allocation6_spill]] }
 0x393   : > { %p20_p11 = scmp.ge.s32.totalorder %s23_s18, 4   ;;  %s1756_s17 = sld [smem:[#allocation7_spill]] }
 0x394   : > { %s1757_s13 = smov %s1433_s14  ;;  %s1758_s14 = smov %s1437_s15 }
 0x395   : > { %s1759_s15 = smov %s1560_s26  ;;  %22 = sbr.rel (!%p20_p11) target bundleno = 6 (0x6), region = 114 }
 0x39a   :  { %1044 = vsyncpa [#allocation4], 1 }
 0x39b   :  { %1046 = vsyncpa [#allocation4 + $0x1], 1 }

</bundles_post_ra>
